<compile_context>
chip_gen: v7x
topology: tpu7x:2x2x1
jax: 0.10.0
libtpu: 0.0.40
codegen_flags: <defaults>
</compile_context>

<pallas_src>
import functools
import math

import jax
import jax.numpy as jnp
from jax.experimental import pallas as pl
from jax.experimental.pallas import tpu as pltpu

_LOG_2PI = math.log(2.0 * math.pi)


def _poisson_kernel(theta0_ref, theta1_ref, xsT_ref, side_ref, out_ref):
    """One N-tile of the Poisson-regression log-density (lane axis = N)."""
    xsT = xsT_ref[...]                     # [Dp, TILE]  f32, lane-dense
    t0 = theta0_ref[...]                   # [Dp, 1]     resident across grid
    t1 = theta1_ref[...]                   # [Dp, 1]

    # K = Dp (tiny) contraction on the VPU: broadcast-multiply + sublane
    # reduce. The MXU would be pure weight-push latency at this K.
    intercept = jnp.sum(xsT * t0, axis=0, keepdims=True)   # [1, TILE]
    slope = jnp.sum(xsT * t1, axis=0, keepdims=True)       # [1, TILE]

    ys = side_ref[0:1, :]                  # [1, TILE]
    ys_lgamma = side_ref[1:2, :]           # lgamma(ys + 1), precomputed
    xs_math = side_ref[2:3, :]             # [1, TILE]

    log_rate = intercept + slope * xs_math
    rate = jnp.exp(log_rate)               # EUP slot (otherwise idle)
    # Zero-padded tail columns contribute exactly -1 each; corrected in the
    # wrapper instead of masking here.
    data_lp = ys * log_rate - rate - ys_lgamma

    # Per-tile partial sum, splatted into a lane-dense [1, 128] output block
    # (unmasked vst; independent per tile -> "parallel" grid semantics).
    out_ref[...] = jnp.zeros((1, 128), jnp.float32) + jnp.sum(data_lp)


def _round_up(x: int, m: int) -> int:
    return ((x + m - 1) // m) * m


@functools.partial(jax.jit, static_argnames=("tile_n",))
def poisson_regression_forward(xs, theta_0, theta_1, xs_math, ys, loc, scale,
                               *, tile_n: int = 32768):
    n, d = xs.shape
    f32 = jnp.float32
    xs = xs.astype(f32)
    xs_math = xs_math.reshape(n).astype(f32)
    ys_f = ys.reshape(n).astype(f32)
    theta_0 = theta_0.astype(f32)
    theta_1 = theta_1.astype(f32)
    loc = jnp.asarray(loc, f32)
    scale = jnp.asarray(scale, f32)

    # ---- tiling along N (the lane axis) ----
    tile = min(tile_n, _round_up(n, 128))   # multiple of 128
    n_pad = _round_up(n, tile)
    d_pad = _round_up(d, 8)                 # sublane-align the feature dim

    # ---- layout plumbing (single fused pad+transpose producers; zero fill) --
    xsT = jnp.pad(xs, ((0, n_pad - n), (0, d_pad - d))).T          # [Dp, Np]
    # TODO(synk): lax.lgamma has no Pallas TPU lowering; lgamma(ys+1) depends
    # only on the data, so it is precomputed here and streamed with ys/xs_math.
    side = jnp.stack([ys_f, jax.lax.lgamma(ys_f + 1.0), xs_math], axis=0)
    side = jnp.pad(side, ((0, 0), (0, n_pad - n)))                 # [3, Np]
    theta0_col = jnp.zeros((d_pad, 1), f32).at[:d, 0].set(theta_0)
    theta1_col = jnp.zeros((d_pad, 1), f32).at[:d, 0].set(theta_1)

    num_tiles = n_pad // tile

    partials = pl.pallas_call(
        _poisson_kernel,
        out_shape=jax.ShapeDtypeStruct((1, num_tiles * 128), f32),
        grid=(num_tiles,),
        in_specs=[
            pl.BlockSpec((d_pad, 1), lambda i: (0, 0)),      # theta_0 [Dp,1]
            pl.BlockSpec((d_pad, 1), lambda i: (0, 0)),      # theta_1 [Dp,1]
            pl.BlockSpec((d_pad, tile), lambda i: (0, i)),   # xs^T tile
            pl.BlockSpec((3, tile), lambda i: (0, i)),       # ys/lgamma/xs_math
        ],
        out_specs=pl.BlockSpec((1, 128), lambda i: (0, i)),  # per-tile partial
        compiler_params=pltpu.CompilerParams(
            dimension_semantics=("parallel",),
            vmem_limit_bytes=32 * 1024 * 1024),
    )(theta0_col, theta1_col, xsT, side)

    data_lp_sum = jnp.sum(partials[0, ::128])
    # Each zero-padded column contributed exactly -1; add it back.
    pad_correction = jnp.asarray(n_pad - n, f32)

    # Prior (constraint) contribution: O(2D) scalars, computed in the wrapper.
    dev0 = (theta_0 - loc) / scale
    dev1 = (theta_1 - loc) / scale
    prior_lp = (jnp.sum(-0.5 * dev0 * dev0 - jnp.log(scale) - 0.5 * _LOG_2PI)
                + jnp.sum(-0.5 * dev1 * dev1 - jnp.log(scale) - 0.5 * _LOG_2PI))

    return data_lp_sum + pad_correction + prior_lp


def _reference(xs, theta_0, theta_1, xs_math, ys, *, loc, scale):
    intercept = xs @ theta_0
    slope = xs @ theta_1
    log_rate = intercept + slope * xs_math
    rate = jnp.exp(log_rate)
    ys_f = ys.astype(jnp.float32)
    data_lp = ys_f * log_rate - rate - jax.lax.lgamma(ys_f + 1.0)

    def nlp(t):
        d = (t - loc) / scale
        return jnp.sum(-0.5 * d * d - jnp.log(scale) - 0.5 * _LOG_2PI)

    return nlp(theta_0) + nlp(theta_1) + jnp.sum(data_lp)


if __name__ == "__main__":
    N, D = 200, 8          # N data points (deliberately not 128-aligned), D features
    loc, scale = 0.0, 1.0  # prior Normal(loc, scale)

    key = jax.random.PRNGKey(0)
    k_xs, k_xm, k_t0, k_t1, k_ys = jax.random.split(key, 5)

    xs = jax.random.normal(k_xs, (N, D), dtype=jnp.float32) * 0.3
    xs_math = jax.random.normal(k_xm, (N,), dtype=jnp.float32)
    # Deterministic parameter init (synthetic; no checkpoint load).
    theta_0 = 0.1 * jax.random.normal(k_t0, (D,), dtype=jnp.float32)
    theta_1 = 0.1 * jax.random.normal(k_t1, (D,), dtype=jnp.float32)
    ys = jax.random.poisson(k_ys, lam=2.0, shape=(N,)).astype(jnp.float32)

    out = poisson_regression_forward(xs, theta_0, theta_1, xs_math, ys,
                                     loc, scale)
    out = jax.block_until_ready(out)

    ref = _reference(xs, theta_0, theta_1, xs_math, ys, loc=loc, scale=scale)
    assert jnp.allclose(out, ref, rtol=1e-4, atol=1e-4), (out, ref)

    print("KERNEL_OK")
</pallas_src>

<mosaic_0001>
module attributes {stable_mosaic.version = 11 : i64} {
  func.func @_poisson_kernel(%arg0: i32, %arg1: memref<8x1xf32, #tpu.memory_space<vmem>>, %arg2: memref<8x1xf32, #tpu.memory_space<vmem>>, %arg3: memref<8x256xf32, #tpu.memory_space<vmem>>, %arg4: memref<3x256xf32, #tpu.memory_space<vmem>>, %arg5: memref<1x128xf32, #tpu.memory_space<vmem>>) attributes {dimension_semantics = [#tpu.dimension_semantics<parallel>], iteration_bounds = array<i64: 1>, scalar_prefetch = 0 : i64, scratch_operands = 0 : i64, tpu.core_type = #tpu.core_type<tc>, window_params = [{pipeline_mode = #tpu.pipeline_mode<synchronous>, transform_indices = @transform_0, window_bounds = array<i64: 8, 1>}, {pipeline_mode = #tpu.pipeline_mode<synchronous>, transform_indices = @transform_1, window_bounds = array<i64: 8, 1>}, {transform_indices = @transform_2, window_bounds = array<i64: 8, 256>}, {transform_indices = @transform_3, window_bounds = array<i64: 3, 256>}, {transform_indices = @transform_4, window_bounds = array<i64: 1, 128>}]} {
    %c0 = arith.constant 0 : index
    %c0_0 = arith.constant 0 : index
    %0 = vector.load %arg3[%c0, %c0_0] : memref<8x256xf32, #tpu.memory_space<vmem>>, vector<8x256xf32>
    %c0_1 = arith.constant 0 : index
    %c0_2 = arith.constant 0 : index
    %1 = vector.load %arg1[%c0_1, %c0_2] : memref<8x1xf32, #tpu.memory_space<vmem>>, vector<8x1xf32>
    %c0_3 = arith.constant 0 : index
    %c0_4 = arith.constant 0 : index
    %2 = vector.load %arg2[%c0_3, %c0_4] : memref<8x1xf32, #tpu.memory_space<vmem>>, vector<8x1xf32>
    %3 = vector.broadcast %1 : vector<8x1xf32> to vector<8x256xf32>
    %4 = arith.mulf %0, %3 : vector<8x256xf32>
    %cst = arith.constant dense<0.000000e+00> : vector<256xf32>
    %5 = vector.multi_reduction <add>, %4, %cst [0] : vector<8x256xf32> to vector<256xf32>
    %6 = vector.shape_cast %5 : vector<256xf32> to vector<1x256xf32>
    %7 = vector.broadcast %2 : vector<8x1xf32> to vector<8x256xf32>
    %8 = arith.mulf %0, %7 : vector<8x256xf32>
    %cst_5 = arith.constant dense<0.000000e+00> : vector<256xf32>
    %9 = vector.multi_reduction <add>, %8, %cst_5 [0] : vector<8x256xf32> to vector<256xf32>
    %10 = vector.shape_cast %9 : vector<256xf32> to vector<1x256xf32>
    %c0_6 = arith.constant 0 : index
    %c0_7 = arith.constant 0 : index
    %11 = vector.load %arg4[%c0_6, %c0_7] : memref<3x256xf32, #tpu.memory_space<vmem>>, vector<1x256xf32>
    %c1 = arith.constant 1 : index
    %c0_8 = arith.constant 0 : index
    %12 = vector.load %arg4[%c1, %c0_8] : memref<3x256xf32, #tpu.memory_space<vmem>>, vector<1x256xf32>
    %c2 = arith.constant 2 : index
    %c0_9 = arith.constant 0 : index
    %13 = vector.load %arg4[%c2, %c0_9] : memref<3x256xf32, #tpu.memory_space<vmem>>, vector<1x256xf32>
    %14 = arith.mulf %10, %13 : vector<1x256xf32>
    %15 = arith.addf %6, %14 : vector<1x256xf32>
    %16 = math.exp %15 : vector<1x256xf32>
    %17 = arith.mulf %11, %15 : vector<1x256xf32>
    %18 = arith.subf %17, %16 : vector<1x256xf32>
    %19 = arith.subf %18, %12 : vector<1x256xf32>
    %cst_10 = arith.constant 0.000000e+00 : f32
    %20 = vector.broadcast %cst_10 : f32 to vector<1x128xf32>
    %21 = vector.shape_cast %19 : vector<1x256xf32> to vector<1x1x256xf32>
    %cst_11 = arith.constant dense<0.000000e+00> : vector<1xf32>
    %22 = vector.multi_reduction <add>, %21, %cst_11 [1, 2] : vector<1x1x256xf32> to vector<1xf32>
    %23 = vector.shape_cast %22 : vector<1xf32> to vector<1x1x1xf32>
    %24 = vector.extract %23[0, 0, 0] : f32 from vector<1x1x1xf32>
    %25 = vector.broadcast %24 : f32 to vector<1x128xf32>
    %26 = arith.addf %20, %25 : vector<1x128xf32>
    %c0_12 = arith.constant 0 : index
    %c0_13 = arith.constant 0 : index
    %27 = vector.load %arg5[%c0_12, %c0_13] : memref<1x128xf32, #tpu.memory_space<vmem>>, vector<1x128xf32>
    tpu.vector_store %arg5[%c0_12, %c0_13], %26 {strides = array<i32>} : memref<1x128xf32, #tpu.memory_space<vmem>>, vector<1x128xf32>,
    return
  }
  func.func @transform_0(%arg0: i32) -> (i32, i32) {
    %c0_i32 = arith.constant 0 : i32
    %c0_i32_0 = arith.constant 0 : i32
    %c0_i32_1 = arith.constant 0 : i32
    return %c0_i32, %c0_i32_0 : i32, i32
  }
  func.func @transform_1(%arg0: i32) -> (i32, i32) {
    %c0_i32 = arith.constant 0 : i32
    %c0_i32_0 = arith.constant 0 : i32
    %c0_i32_1 = arith.constant 0 : i32
    return %c0_i32, %c0_i32_0 : i32, i32
  }
  func.func @transform_2(%arg0: i32) -> (i32, i32) {
    %c0_i32 = arith.constant 0 : i32
    %c0_i32_0 = arith.constant 0 : i32
    return %c0_i32, %arg0 : i32, i32
  }
  func.func @transform_3(%arg0: i32) -> (i32, i32) {
    %c0_i32 = arith.constant 0 : i32
    %c0_i32_0 = arith.constant 0 : i32
    return %c0_i32, %arg0 : i32, i32
  }
  func.func @transform_4(%arg0: i32) -> (i32, i32) {
    %c0_i32 = arith.constant 0 : i32
    %c0_i32_0 = arith.constant 0 : i32
    return %c0_i32, %arg0 : i32, i32
  }
}

</mosaic_0001>

<bundles_post_ra>
// kernel: poisson_regression_forward.1
= control target key start
LH: loop header
LB: loop body
LE: loop exit
PB: predicated region body
PF: predicated region fallthrough
CT: control target
= control target key end

     0   :  { %v164_v0 = vmov 0   ;;  %v65_v6 = vlaneseq  ;;  %v165_v46 = vmov 1966171168   ;;  %vm133_vm0 = vcmask 1040384   ;;  %s215_s1 = inlined_call_operand.vmem [shape: f32[8,1], index: 1, kind: input, shape index: {}]   ;;  %s216_s0 = inlined_call_operand.vmem [shape: f32[8,1], index: 0, kind: input, shape index: {}]   ;;  %s217_s2 = inlined_call_operand.vmem [shape: f32[8,256], index: 2, kind: input, shape index: {}]   ;;  %s218_s3 = inlined_call_operand.vmem [shape: f32[3,256], index: 3, kind: input, shape index: {}]   ;;  %s219_s4 = inlined_call_operand.vmem [shape: f32[1,128], index: 4, kind: output, shape index: {}]  }
   0x1   :  { %159 = vset.pattern.permute.xlu0 %v164_v0  ;;  %v20_v1 = vld [vmem:[%s215_s1] sm:$0xff]  ;;  %v18_v4 = vld [vmem:[%s217_s2 + $0x8] sm:$0xff]  ;;  %v87_v47 = vunpack.c.l.s4 %v165_v46 }
   0x2   :  { %42 = vperm.xlu0 %159, %v20_v1   ;;  %v19_v2 = vld [vmem:[%s216_s0] sm:$0xff]  ;;  %v66_v12 = vshrl.u32 %v65_v6, 7 }
   0x3   :  { %v17_v3 = vld [vmem:[%s217_s2] sm:$0xff]  ;;  %v88_v50 = vunpack.c.0.s8 %v87_v47 }
   0x4   :  { %v67_v21 = vsub.s32 0, %v66_v12  ;;  %v71_v22 = vsub.s32 1, %v66_v12  ;;  %v154_v27 = vld [vmem:[%s218_s3 + $0x2] ss:$4 sm:$0x3] }
   0x5   :  { %v91_v52 = vsub.s32 %v88_v50, %v66_v12  ;;  %v59_v58 = vld [vmem:[%s218_s3] ss:$4 sm:$0x3]  ;;  %v153_v62 = vld [vmem:[%s218_s3 + $0x1] ss:$4 sm:$0x3] }
   0x6   :  { %23 = vperm.xlu0 %159, %v19_v2   ;;  %v68_v32 = vrot.slane %v154_v27, %v67_v21  ;;  %v72_v33 = vrot.slane %v154_v27, %v71_v22 }
  0x81   :  { %v43_v5 = vpop.permute.xlu0 %42 }
  0x82   :  { %v45_v7 = vmul.f32 %v43_v5, %v17_v3  ;;  %v46_v8 = vmul.f32 %v43_v5, %v18_v4 }
  0x84   :  { %v47_v9 = vrot.slane %v45_v7, 4  ;;  %v53_v10 = vrot.slane %v46_v8, 4 }
  0x85   :  { %v24_v11 = vpop.permute.xlu0 %23 }
  0x86   :  { %v48_v13 = vadd.f32 %v47_v9, %v45_v7  ;;  %v54_v14 = vadd.f32 %v53_v10, %v46_v8  ;;  %v26_v15 = vmul.f32 %v24_v11, %v17_v3  ;;  %v27_v16 = vmul.f32 %v24_v11, %v18_v4 }
  0x88   :  { %v49_v17 = vrot.slane %v48_v13, 2  ;;  %v55_v18 = vrot.slane %v54_v14, 2  ;;  %v28_v19 = vrot.slane %v26_v15, 4  ;;  %v34_v20 = vrot.slane %v27_v16, 4 }
  0x8a   :  { %v50_v23 = vadd.f32 %v49_v17, %v48_v13  ;;  %v56_v24 = vadd.f32 %v55_v18, %v54_v14  ;;  %v29_v25 = vadd.f32 %v28_v19, %v26_v15  ;;  %v35_v26 = vadd.f32 %v34_v20, %v27_v16 }
  0x8c   :  { %v51_v28 = vrot.slane %v50_v23, 1  ;;  %v57_v29 = vrot.slane %v56_v24, 1  ;;  %v30_v30 = vrot.slane %v29_v25, 2  ;;  %v36_v31 = vrot.slane %v35_v26, 2 }
  0x8e   :  { %v52_v34 = vadd.f32 %v51_v28, %v50_v23  ;;  %v58_v35 = vadd.f32 %v57_v29, %v56_v24  ;;  %v31_v36 = vadd.f32 %v30_v30, %v29_v25  ;;  %v37_v37 = vadd.f32 %v36_v31, %v35_v26 }
  0x90   :  { %v32_v38 = vrot.slane %v31_v36, 1  ;;  %v38_v39 = vrot.slane %v37_v37, 1  ;;  %v75_v42 = vmul.f32 %v68_v32, %v52_v34  ;;  %v76_v43 = vmul.f32 %v72_v33, %v58_v35 }
  0x92   :  { %v33_v40 = vadd.f32 %v32_v38, %v31_v36  ;;  %v39_v41 = vadd.f32 %v38_v39, %v37_v37 }
  0x94   :  { %v77_v44 = vadd.f32 %v75_v42, %v33_v40  ;;  %v78_v45 = vadd.f32 %v76_v43, %v39_v41 }
  0x96   :  { %v79_v48 = vmul.f32 1.442695, %v77_v44  ;;  %v81_v49 = vmul.f32 1.442695, %v78_v45  ;;  %v85_v51 = vcombine.low %v77_v44, %v78_v45 }
  0x98   :  { %160 = vpow2.f32 %v79_v48  ;;  %v92_v53 = vrot.slane %v85_v51, %v91_v52 }
  0x99   :  { %162 = vpow2.f32 %v81_v49 }
  0x9a   :  { %v99_v56 = vrot.slane %v92_v53, %v91_v52 }
  0x9c   :  { %v101_v60 = vmul.f32 %v99_v56, %v59_v58 }
  0xa2   :  { %v161_v54 = vpop.eup %160 }
  0xa3   :  { %v163_v55 = vpop.eup %162 }
  0xa4   :  { %v104_v57 = vcombine.low %v161_v54, %v163_v55 }
  0xa6   :  { %v111_v59 = vrot.slane %v104_v57, %v91_v52 }
  0xa8   :  { %v118_v61 = vrot.slane %v111_v59, %v91_v52 }
  0xaa   :  { %v120_v63 = vsub.f32 %v101_v60, %v118_v61 }
  0xac   :  { %v121_v0 = vsub.f32 %v120_v63, %v153_v62 }
  0xae   :  { %v126_v1 = vrot.slane %v121_v0, %v67_v21  ;;  %v130_v2 = vrot.slane %v121_v0, %v71_v22 }
  0xb0   :  { %v134_v3 = vsel %vm133_vm0, %v126_v1, 0.0  ;;  %v135_v4 = vsel %vm133_vm0, %v130_v2, 0.0 }
  0xb1   :  { %v136_v5 = vadd.f32 %v135_v4, %v134_v3 }
  0xb3   :  { %137 = vadd.xlane.f32.xlu1 %v136_v5 }
 0x140   :  { %v138_v6 = vpop.xlane.xlu1 %137 }
 0x141   :  { %v139_v7 = vrot.slane %v138_v6, 4 }
 0x143   :  { %v140_v8 = vadd.f32 %v139_v7, %v138_v6 }
 0x145   :  { %v141_v9 = vrot.slane %v140_v8, 2 }
 0x147   :  { %v142_v10 = vadd.f32 %v141_v9, %v140_v8 }
 0x149   :  { %v143_v11 = vrot.slane %v142_v10, 1 }
 0x14b   :  { %v144_v12 = vadd.f32 %v143_v11, %v142_v10 }
 0x14d   :  { %155 = vpush %v144_v12 }
 0x17e   :  { %s156_s26 = spop %155 }
 0x17f   :  { %v146_v13 = vstv %s156_s26 }
 0x180   :  { %148 = vst [vmem:[%s219_s4] sm:$0x1] %v146_v13 }

</bundles_post_ra>
